<compile_context>
chip_gen: v7x
topology: tpu7x:2x2x1
jax: 0.10.0
libtpu: 0.0.40
codegen_flags: <defaults>
</compile_context>

<pallas_src>
import numpy as np
import jax
import jax.numpy as jnp
from jax.experimental import pallas as pl
from jax.experimental.pallas import tpu as pltpu

_TWO_PI = 2.0 * np.pi
_INV_2PI = 1.0 / _TWO_PI

_NB = 8      # particle sub-block (sublanes) per inner-loop step
_TPI = 256   # point sub-tile (lanes) per inner-loop step


def _velocity_derivs_kernel(inp_ref, pts_ref, out_ref, acc_ref):
    """Grid = (B, point-tiles, particle-chunks); particle axis = reduction.

    inp_ref: (1, n_chunk, 4) particle features (y, x, tau, sig)
    pts_ref: (1, 2, tp)      query points (y-row, x-row), lane-dense
    out_ref: (1, 12, tp)     12 derivative features, lane-dense
    acc_ref: (16, tp) f32 VMEM scratch accumulator (rows 0..8 used)
    """
    n = pl.program_id(2)
    n_chunk = inp_ref.shape[1]
    tp = out_ref.shape[2]
    tpi = _TPI if tp >= _TPI else tp
    n_sub = n_chunk // _NB

    @pl.when(n == 0)
    def _():
        acc_ref[...] = jnp.zeros_like(acc_ref)

    # Static loop over point sub-tiles keeps every (NB, tpi) temporary at
    # <= 2 vregs so the kernel stays register-resident (no spills).
    for h in range(tp // tpi):
        lo = h * tpi
        # loop-invariant broadcasts hoisted out of the particle loop
        py = jnp.broadcast_to(pts_ref[0, 0:1, lo:lo + tpi], (_NB, tpi))
        px = jnp.broadcast_to(pts_ref[0, 1:2, lo:lo + tpi], (_NB, tpi))

        def body(j, carry):
            base = pl.multiple_of(j * _NB, _NB)
            sub = inp_ref[0, pl.ds(base, _NB), :]          # (NB, 4)
            y = sub[:, 0:1]
            x = sub[:, 1:2]
            sig = sub[:, 3:4]
            a = 1.0 / (sig * sig)                          # (NB, 1)
            # 1/(2*pi) folded into tau; lane-broadcast hoisted (3 uses below)
            tau = jnp.broadcast_to(sub[:, 2:3] * _INV_2PI, (_NB, tpi))

            dy = py - y
            dx = px - x
            dy2 = dy * dy
            dx2 = dx * dx
            s = dy2 + dx2

            a_s = a * s
            E = jnp.exp(-a_s)                              # EUP
            omE = 1.0 - E
            aEs = a_s * E

            # 1/s: EUP approx reciprocal + one Newton step (keeps VALU free)
            r0 = pl.reciprocal(s, approx=True)
            inv_s = r0 * (2.0 - s * r0)
            inv_s2 = inv_s * inv_s
            inv_s3 = inv_s2 * inv_s

            tG = tau * (omE * inv_s)
            tGp = tau * ((aEs - omE) * inv_s2)
            tGpp = tau * ((omE + omE - aEs * (a_s + 2.0)) * inv_s3)

            tGp2 = tGp + tGp
            tGpp2 = tGpp + tGpp
            dydx = dy * dx
            A = dy2 * tGpp2 + tGp
            Bx = dx2 * tGpp2 + tGp
            dxt = dx + dx
            dyt = dy + dy

            c0, c1, c2, c3, c4, c5, c6, c7, c8 = carry
            return (c0 + tG * dx,                  # vel_y
                    c1 + tG * dy,                  # -vel_x
                    c2 + tGp2 * dydx,              # dv_dy    (= -du_dx)
                    c3 + (dx2 * tGp2 + tG),        # dv_dx
                    c4 + (dy2 * tGp2 + tG),        # -du_dy
                    c5 + dxt * A,                  # d2v_dy2  (= -d2u_dydx)
                    c6 + dxt * (Bx + tGp2),        # d2v_dx2
                    c7 + dyt * Bx,                 # d2v_dxdy (= -d2u_dx2)
                    c8 + dyt * (A + tGp2))         # -d2u_dy2

        init = tuple(jnp.zeros((_NB, tpi), jnp.float32) for _ in range(9))
        carry = jax.lax.fori_loop(0, n_sub, body, init, unroll=2)

        # Cross-sublane reduction (XLU) + accumulator update: only once per
        # point sub-tile per grid step (amortized over n_chunk particles).
        for r, c in enumerate(carry):
            acc_ref[r:r + 1, lo:lo + tpi] += jnp.sum(c, axis=0, keepdims=True)

    @pl.when(n == pl.num_programs(2) - 1)
    def _():
        a9 = acc_ref[...]
        # Assemble all 12 rows (sign fixes + negated duplicates) in registers
        # and store the (12, tp) output block densely, once.
        out_ref[0, :, :] = jnp.concatenate(
            [a9[0:1],            # vel_y
             -a9[1:2],           # vel_x
             a9[2:4],            # dv_dy, dv_dx
             -a9[4:5],           # du_dy
             -a9[2:3],           # du_dx    = -dv_dy
             a9[5:8],            # d2v_dy2, d2v_dx2, d2v_dxdy
             -a9[8:9],           # d2u_dy2
             -a9[7:8],           # d2u_dx2  = -d2v_dxdy
             -a9[5:6]],          # d2u_dydx = -d2v_dy2
            axis=0)


def _round_up(v, m):
    return ((v + m - 1) // m) * m


def _pick_point_tile(batch, n_points):
    """Lane tile for the point axis: multiple of 128, <=25% padding waste and
    (for 2-TensorCore chips, e.g. v7x) at least two 'parallel' grid steps."""
    p128 = _round_up(max(n_points, 1), 128)
    tp = 128
    for cand in (512, 256):
        if cand <= p128 and _round_up(n_points, cand) * 4 <= n_points * 5:
            tp = cand
            break
    while tp > 128 and batch * ((p128 + tp - 1) // tp) < 2:
        tp //= 2
    return tp


def _pick_particle_chunk(n_particles):
    """Reduction-axis chunk: multiple of 2*_NB (even inner trip count for
    unroll=2), ~1024 particles per grid step, balanced to limit padding."""
    n_pad = _round_up(max(n_particles, 1), 2 * _NB)
    n_steps = -(-n_pad // 1024)
    n_chunk = _round_up(-(-n_pad // n_steps), 2 * _NB)
    return n_chunk, n_chunk * n_steps


def velocity_derivatives(inp, points, order=2):
    """inp: (B, N, 4) particle features; points: (B, ..., 2) query points.

    Returns (B, P, 12) with P = prod(points.shape[1:-1]) — matches the
    PyTorch module output for order == 2."""
    assert order == 2, "only order=2 (the module default) is implemented"
    inp = jnp.asarray(inp, jnp.float32)
    points = jnp.asarray(points, jnp.float32)
    B, N, _ = inp.shape
    pts = points.reshape(B, -1, 2)
    P = pts.shape[1]

    n_chunk, n_pad = _pick_particle_chunk(N)
    if n_pad != N:
        # padding particles: tau = 0 (zero contribution) and far away (no 0/0)
        pad = jnp.broadcast_to(
            jnp.asarray([1.0e6, 1.0e6, 0.0, 1.0], jnp.float32),
            (B, n_pad - N, 4))
        inp_p = jnp.concatenate([inp, pad], axis=1)
    else:
        inp_p = inp

    tp = _pick_point_tile(B, P)
    p_pad = _round_up(P, tp)
    if p_pad != P:
        pts_p = jnp.concatenate(
            [pts, jnp.full((B, p_pad - P, 2), 1.0e5, jnp.float32)], axis=1)
    else:
        pts_p = pts
    pts_t = jnp.transpose(pts_p, (0, 2, 1))            # (B, 2, P_pad) lane-dense

    grid = (B, p_pad // tp, n_pad // n_chunk)

    out = pl.pallas_call(
        _velocity_derivs_kernel,
        out_shape=jax.ShapeDtypeStruct((B, 12, p_pad), jnp.float32),
        grid_spec=pltpu.PrefetchScalarGridSpec(
            num_scalar_prefetch=0,
            grid=grid,
            in_specs=[
                pl.BlockSpec((1, n_chunk, 4), lambda b, p, n: (b, n, 0)),
                pl.BlockSpec((1, 2, tp), lambda b, p, n: (b, 0, p)),
            ],
            out_specs=pl.BlockSpec((1, 12, tp), lambda b, p, n: (b, 0, p)),
            scratch_shapes=[pltpu.VMEM((16, tp), jnp.float32)],
        ),
        compiler_params=pltpu.CompilerParams(
            dimension_semantics=("parallel", "parallel", "arbitrary"),
            vmem_limit_bytes=16 * 1024 * 1024),
    )(inp_p, pts_t)

    # NOTE: kept to match the module's (B, P, 12) layout; drop this transpose
    # if the consumer can take the lane-dense (B, 12, P) directly.
    return jnp.transpose(out, (0, 2, 1))[:, :P, :]


def _reference(inp, points):
    """Pure-JAX reference computing all 12 features independently."""
    inp = jnp.asarray(inp, jnp.float32)
    B = inp.shape[0]
    pts = jnp.asarray(points, jnp.float32).reshape(B, -1, 2)
    y, x, tau, sig = [inp[..., i][:, :, None] for i in range(4)]   # (B,N,1)
    py = pts[:, None, :, 0]                                        # (B,1,P)
    px = pts[:, None, :, 1]
    dy = py - y
    dx = px - x
    s = dy * dy + dx * dx
    a = 1.0 / (sig * sig)
    E = jnp.exp(-a * s)
    G = (1.0 - E) / (_TWO_PI * s)
    Gp = (a * E * s - (1.0 - E)) / (_TWO_PI * s * s)
    Gpp = (-a * a * E * s * s - 2.0 * a * E * s + 2.0 - 2.0 * E) / (_TWO_PI * s ** 3)
    tG, tGp, tGpp = tau * G, tau * Gp, tau * Gpp
    feats = [
        tG * dx, -tG * dy,
        2.0 * tGp * dy * dx, 2.0 * dx * dx * tGp + tG,
        -(2.0 * dy * dy * tGp + tG), -2.0 * tGp * dx * dy,
        2.0 * dx * (2.0 * dy * dy * tGpp + tGp),
        6.0 * dx * tGp + 4.0 * dx ** 3 * tGpp,
        2.0 * dy * (2.0 * dx * dx * tGpp + tGp),
        -(6.0 * dy * tGp + 4.0 * dy ** 3 * tGpp),
        -2.0 * dy * (2.0 * dx * dx * tGpp + tGp),
        -2.0 * dx * (2.0 * dy * dy * tGpp + tGp),
    ]
    return jnp.stack([f.sum(axis=1) for f in feats], axis=-1)      # (B,P,12)


if __name__ == "__main__":
    key = jax.random.PRNGKey(0)
    k1, k2, k3, k4, k5 = jax.random.split(key, 5)

    # ---- Test 1: small config matching the module's typical use -----------
    B, N = 2, 8                       # batch, particles
    PH, PW = 8, 16                    # query points: 8*16 = 128 per batch

    y = jax.random.uniform(k1, (B, N), jnp.float32, 1.0, 9.0)
    x = jax.random.uniform(k2, (B, N), jnp.float32, 1.0, 9.0)
    tau = jax.random.normal(k3, (B, N), jnp.float32)
    sig = jax.random.uniform(k4, (B, N), jnp.float32, 0.3, 1.0)
    inp = jnp.stack([y, x, tau, sig], axis=-1)                 # (B, N, 4)
    points = jax.random.uniform(k5, (B, PH, PW, 2), jnp.float32, 0.0, 10.0)

    out = jax.block_until_ready(velocity_derivatives(inp, points, order=2))
    ref = _reference(inp, points)
    assert out.shape == (B, PH * PW, 12)
    np.testing.assert_allclose(np.asarray(out), np.asarray(ref),
                               rtol=5e-4, atol=1e-4)

    # ---- Test 2: multi-chunk particle reduction + several point tiles -----
    kk = jax.random.split(jax.random.PRNGKey(1), 5)
    B2, N2, P2 = 1, 2500, 600
    y2 = jax.random.uniform(kk[0], (B2, N2), jnp.float32, 0.0, 4.0)
    x2 = jax.random.uniform(kk[1], (B2, N2), jnp.float32, 0.0, 4.0)
    tau2 = jax.random.normal(kk[2], (B2, N2), jnp.float32)
    sig2 = jax.random.uniform(kk[3], (B2, N2), jnp.float32, 0.3, 1.0)
    inp2 = jnp.stack([y2, x2, tau2, sig2], axis=-1)
    points2 = jax.random.uniform(kk[4], (B2, P2, 2), jnp.float32, 6.0, 10.0)

    out2 = jax.block_until_ready(velocity_derivatives(inp2, points2, order=2))
    ref2 = _reference(inp2, points2)
    assert out2.shape == (B2, P2, 12)
    np.testing.assert_allclose(np.asarray(out2), np.asarray(ref2),
                               rtol=1e-3, atol=5e-4)

    # ---- Test 3: wide point tile (tp=512 -> two inner point sub-tiles) ----
    kk = jax.random.split(jax.random.PRNGKey(2), 5)
    B3, N3, P3 = 1, 64, 2048
    y3 = jax.random.uniform(kk[0], (B3, N3), jnp.float32, 0.0, 4.0)
    x3 = jax.random.uniform(kk[1], (B3, N3), jnp.float32, 0.0, 4.0)
    tau3 = jax.random.normal(kk[2], (B3, N3), jnp.float32)
    sig3 = jax.random.uniform(kk[3], (B3, N3), jnp.float32, 0.3, 1.0)
    inp3 = jnp.stack([y3, x3, tau3, sig3], axis=-1)
    points3 = jax.random.uniform(kk[4], (B3, P3, 2), jnp.float32, 6.0, 10.0)

    out3 = jax.block_until_ready(velocity_derivatives(inp3, points3, order=2))
    ref3 = _reference(inp3, points3)
    assert out3.shape == (B3, P3, 12)
    np.testing.assert_allclose(np.asarray(out3), np.asarray(ref3),
                               rtol=5e-4, atol=2e-4)

    print("KERNEL_OK")
</pallas_src>

<mosaic_0001>
module attributes {stable_mosaic.version = 11 : i64} {
  func.func @_velocity_derivs_kernel(%arg0: i32, %arg1: i32, %arg2: i32, %arg3: memref<1x16x4xf32, #tpu.memory_space<vmem>>, %arg4: memref<1x2x128xf32, #tpu.memory_space<vmem>>, %arg5: memref<1x12x128xf32, #tpu.memory_space<vmem>>, %arg6: memref<16x128xf32, #tpu.memory_space<vmem>>) attributes {dimension_semantics = [#tpu.dimension_semantics<parallel>, #tpu.dimension_semantics<parallel>, #tpu.dimension_semantics<arbitrary>], iteration_bounds = array<i64: 2, 1, 1>, scalar_prefetch = 0 : i64, scratch_operands = 1 : i64, tpu.core_type = #tpu.core_type<tc>, window_params = [{transform_indices = @transform_0, window_bounds = array<i64: 1, 16, 4>}, {transform_indices = @transform_1, window_bounds = array<i64: 1, 2, 128>}, {transform_indices = @transform_2, window_bounds = array<i64: 1, 12, 128>}]} {
    %c0_i32 = arith.constant 0 : i32
    %0 = arith.cmpi eq, %arg2, %c0_i32 : i32
    %1 = arith.extui %0 : i1 to i32
    %c0_i32_0 = arith.constant 0 : i32
    %2 = arith.cmpi ne, %1, %c0_i32_0 : i32
    scf.if %2 {
      %cst_71 = arith.constant 0.000000e+00 : f32
      %230 = vector.broadcast %cst_71 : f32 to vector<16x128xf32>
      %c0_72 = arith.constant 0 : index
      %c0_73 = arith.constant 0 : index
      %231 = vector.load %arg6[%c0_72, %c0_73] : memref<16x128xf32, #tpu.memory_space<vmem>>, vector<16x128xf32>
      tpu.vector_store %arg6[%c0_72, %c0_73], %230 {strides = array<i32>} : memref<16x128xf32, #tpu.memory_space<vmem>>, vector<16x128xf32>,
    } else {
    }
    %c0 = arith.constant 0 : index
    %c0_1 = arith.constant 0 : index
    %c0_2 = arith.constant 0 : index
    %3 = vector.load %arg4[%c0, %c0_1, %c0_2] : memref<1x2x128xf32, #tpu.memory_space<vmem>>, vector<1x1x128xf32>
    %4 = vector.shape_cast %3 : vector<1x1x128xf32> to vector<1x128xf32>
    %5 = vector.shape_cast %4 : vector<1x128xf32> to vector<1x128xf32>
    %6 = vector.broadcast %5 : vector<1x128xf32> to vector<8x128xf32>
    %c0_3 = arith.constant 0 : index
    %c1 = arith.constant 1 : index
    %c0_4 = arith.constant 0 : index
    %7 = vector.load %arg4[%c0_3, %c1, %c0_4] : memref<1x2x128xf32, #tpu.memory_space<vmem>>, vector<1x1x128xf32>
    %8 = vector.shape_cast %7 : vector<1x1x128xf32> to vector<1x128xf32>
    %9 = vector.shape_cast %8 : vector<1x128xf32> to vector<1x128xf32>
    %10 = vector.broadcast %9 : vector<1x128xf32> to vector<8x128xf32>
    %cst = arith.constant 0.000000e+00 : f32
    %11 = vector.broadcast %cst : f32 to vector<8x128xf32>
    %cst_5 = arith.constant 0.000000e+00 : f32
    %12 = vector.broadcast %cst_5 : f32 to vector<8x128xf32>
    %cst_6 = arith.constant 0.000000e+00 : f32
    %13 = vector.broadcast %cst_6 : f32 to vector<8x128xf32>
    %cst_7 = arith.constant 0.000000e+00 : f32
    %14 = vector.broadcast %cst_7 : f32 to vector<8x128xf32>
    %cst_8 = arith.constant 0.000000e+00 : f32
    %15 = vector.broadcast %cst_8 : f32 to vector<8x128xf32>
    %cst_9 = arith.constant 0.000000e+00 : f32
    %16 = vector.broadcast %cst_9 : f32 to vector<8x128xf32>
    %cst_10 = arith.constant 0.000000e+00 : f32
    %17 = vector.broadcast %cst_10 : f32 to vector<8x128xf32>
    %cst_11 = arith.constant 0.000000e+00 : f32
    %18 = vector.broadcast %cst_11 : f32 to vector<8x128xf32>
    %cst_12 = arith.constant 0.000000e+00 : f32
    %19 = vector.broadcast %cst_12 : f32 to vector<8x128xf32>
    %c0_i32_13 = arith.constant 0 : i32
    %c8_i32 = arith.constant 8 : i32
    %20 = arith.muli %c0_i32_13, %c8_i32 : i32
    %21 = tpu.assume_multiple %20, 8 : i32
    %c0_14 = arith.constant 0 : index
    %22 = arith.index_cast %21 : i32 to index
    %c0_15 = arith.constant 0 : index
    %23 = vector.load %arg3[%c0_14, %22, %c0_15] : memref<1x16x4xf32, #tpu.memory_space<vmem>>, vector<1x8x4xf32>
    %24 = vector.shape_cast %23 : vector<1x8x4xf32> to vector<8x4xf32>
    %25 = vector.extract_strided_slice %24 {offsets = [0, 0], sizes = [8, 1], strides = [1, 1]} : vector<8x4xf32> to vector<8x1xf32>
    %26 = vector.extract_strided_slice %24 {offsets = [0, 1], sizes = [8, 1], strides = [1, 1]} : vector<8x4xf32> to vector<8x1xf32>
    %27 = vector.extract_strided_slice %24 {offsets = [0, 3], sizes = [8, 1], strides = [1, 1]} : vector<8x4xf32> to vector<8x1xf32>
    %28 = arith.mulf %27, %27 : vector<8x1xf32>
    %cst_16 = arith.constant 1.000000e+00 : f32
    %29 = vector.broadcast %cst_16 : f32 to vector<8x1xf32>
    %30 = arith.divf %29, %28 : vector<8x1xf32>
    %31 = vector.extract_strided_slice %24 {offsets = [0, 2], sizes = [8, 1], strides = [1, 1]} : vector<8x4xf32> to vector<8x1xf32>
    %cst_17 = arith.constant 0.159154937 : f32
    %32 = vector.broadcast %cst_17 : f32 to vector<8x1xf32>
    %33 = arith.mulf %31, %32 : vector<8x1xf32>
    %34 = vector.shape_cast %33 : vector<8x1xf32> to vector<8x1xf32>
    %35 = vector.broadcast %34 : vector<8x1xf32> to vector<8x128xf32>
    %36 = vector.broadcast %25 : vector<8x1xf32> to vector<8x128xf32>
    %37 = arith.subf %6, %36 : vector<8x128xf32>
    %38 = vector.broadcast %26 : vector<8x1xf32> to vector<8x128xf32>
    %39 = arith.subf %10, %38 : vector<8x128xf32>
    %40 = arith.mulf %37, %37 : vector<8x128xf32>
    %41 = arith.mulf %39, %39 : vector<8x128xf32>
    %42 = arith.addf %40, %41 : vector<8x128xf32>
    %43 = vector.broadcast %30 : vector<8x1xf32> to vector<8x128xf32>
    %44 = arith.mulf %43, %42 : vector<8x128xf32>
    %cst_18 = arith.constant 0.000000e+00 : f32
    %45 = vector.broadcast %cst_18 : f32 to vector<8x128xf32>
    %46 = arith.subf %45, %44 : vector<8x128xf32>
    %47 = math.exp %46 : vector<8x128xf32>
    %cst_19 = arith.constant 1.000000e+00 : f32
    %48 = vector.broadcast %cst_19 : f32 to vector<8x128xf32>
    %49 = arith.subf %48, %47 : vector<8x128xf32>
    %50 = arith.mulf %44, %47 : vector<8x128xf32>
    %51 = tpu.reciprocal %42 {approx = true} : vector<8x128xf32> -> vector<8x128xf32>
    %52 = arith.mulf %42, %51 : vector<8x128xf32>
    %cst_20 = arith.constant 2.000000e+00 : f32
    %53 = vector.broadcast %cst_20 : f32 to vector<8x128xf32>
    %54 = arith.subf %53, %52 : vector<8x128xf32>
    %55 = arith.mulf %51, %54 : vector<8x128xf32>
    %56 = arith.mulf %55, %55 : vector<8x128xf32>
    %57 = arith.mulf %56, %55 : vector<8x128xf32>
    %58 = arith.mulf %49, %55 : vector<8x128xf32>
    %59 = arith.mulf %35, %58 : vector<8x128xf32>
    %60 = arith.subf %50, %49 : vector<8x128xf32>
    %61 = arith.mulf %60, %56 : vector<8x128xf32>
    %62 = arith.mulf %35, %61 : vector<8x128xf32>
    %63 = arith.addf %49, %49 : vector<8x128xf32>
    %cst_21 = arith.constant 2.000000e+00 : f32
    %64 = vector.broadcast %cst_21 : f32 to vector<8x128xf32>
    %65 = arith.addf %44, %64 : vector<8x128xf32>
    %66 = arith.mulf %50, %65 : vector<8x128xf32>
    %67 = arith.subf %63, %66 : vector<8x128xf32>
    %68 = arith.mulf %67, %57 : vector<8x128xf32>
    %69 = arith.mulf %35, %68 : vector<8x128xf32>
    %70 = arith.addf %62, %62 : vector<8x128xf32>
    %71 = arith.addf %69, %69 : vector<8x128xf32>
    %72 = arith.mulf %37, %39 : vector<8x128xf32>
    %73 = arith.mulf %40, %71 : vector<8x128xf32>
    %74 = arith.addf %73, %62 : vector<8x128xf32>
    %75 = arith.mulf %41, %71 : vector<8x128xf32>
    %76 = arith.addf %75, %62 : vector<8x128xf32>
    %77 = arith.addf %39, %39 : vector<8x128xf32>
    %78 = arith.addf %37, %37 : vector<8x128xf32>
    %79 = arith.mulf %59, %39 : vector<8x128xf32>
    %80 = arith.addf %11, %79 : vector<8x128xf32>
    %81 = arith.mulf %59, %37 : vector<8x128xf32>
    %82 = arith.addf %12, %81 : vector<8x128xf32>
    %83 = arith.mulf %70, %72 : vector<8x128xf32>
    %84 = arith.addf %13, %83 : vector<8x128xf32>
    %85 = arith.mulf %41, %70 : vector<8x128xf32>
    %86 = arith.addf %85, %59 : vector<8x128xf32>
    %87 = arith.addf %14, %86 : vector<8x128xf32>
    %88 = arith.mulf %40, %70 : vector<8x128xf32>
    %89 = arith.addf %88, %59 : vector<8x128xf32>
    %90 = arith.addf %15, %89 : vector<8x128xf32>
    %91 = arith.mulf %77, %74 : vector<8x128xf32>
    %92 = arith.addf %16, %91 : vector<8x128xf32>
    %93 = arith.addf %76, %70 : vector<8x128xf32>
    %94 = arith.mulf %77, %93 : vector<8x128xf32>
    %95 = arith.addf %17, %94 : vector<8x128xf32>
    %96 = arith.mulf %78, %76 : vector<8x128xf32>
    %97 = arith.addf %18, %96 : vector<8x128xf32>
    %98 = arith.addf %74, %70 : vector<8x128xf32>
    %99 = arith.mulf %78, %98 : vector<8x128xf32>
    %100 = arith.addf %19, %99 : vector<8x128xf32>
    %c1_i32 = arith.constant 1 : i32
    %c8_i32_22 = arith.constant 8 : i32
    %101 = arith.muli %c1_i32, %c8_i32_22 : i32
    %102 = tpu.assume_multiple %101, 8 : i32
    %c0_23 = arith.constant 0 : index
    %103 = arith.index_cast %102 : i32 to index
    %c0_24 = arith.constant 0 : index
    %104 = vector.load %arg3[%c0_23, %103, %c0_24] : memref<1x16x4xf32, #tpu.memory_space<vmem>>, vector<1x8x4xf32>
    %105 = vector.shape_cast %104 : vector<1x8x4xf32> to vector<8x4xf32>
    %106 = vector.extract_strided_slice %105 {offsets = [0, 0], sizes = [8, 1], strides = [1, 1]} : vector<8x4xf32> to vector<8x1xf32>
    %107 = vector.extract_strided_slice %105 {offsets = [0, 1], sizes = [8, 1], strides = [1, 1]} : vector<8x4xf32> to vector<8x1xf32>
    %108 = vector.extract_strided_slice %105 {offsets = [0, 3], sizes = [8, 1], strides = [1, 1]} : vector<8x4xf32> to vector<8x1xf32>
    %109 = arith.mulf %108, %108 : vector<8x1xf32>
    %cst_25 = arith.constant 1.000000e+00 : f32
    %110 = vector.broadcast %cst_25 : f32 to vector<8x1xf32>
    %111 = arith.divf %110, %109 : vector<8x1xf32>
    %112 = vector.extract_strided_slice %105 {offsets = [0, 2], sizes = [8, 1], strides = [1, 1]} : vector<8x4xf32> to vector<8x1xf32>
    %cst_26 = arith.constant 0.159154937 : f32
    %113 = vector.broadcast %cst_26 : f32 to vector<8x1xf32>
    %114 = arith.mulf %112, %113 : vector<8x1xf32>
    %115 = vector.shape_cast %114 : vector<8x1xf32> to vector<8x1xf32>
    %116 = vector.broadcast %115 : vector<8x1xf32> to vector<8x128xf32>
    %117 = vector.broadcast %106 : vector<8x1xf32> to vector<8x128xf32>
    %118 = arith.subf %6, %117 : vector<8x128xf32>
    %119 = vector.broadcast %107 : vector<8x1xf32> to vector<8x128xf32>
    %120 = arith.subf %10, %119 : vector<8x128xf32>
    %121 = arith.mulf %118, %118 : vector<8x128xf32>
    %122 = arith.mulf %120, %120 : vector<8x128xf32>
    %123 = arith.addf %121, %122 : vector<8x128xf32>
    %124 = vector.broadcast %111 : vector<8x1xf32> to vector<8x128xf32>
    %125 = arith.mulf %124, %123 : vector<8x128xf32>
    %cst_27 = arith.constant 0.000000e+00 : f32
    %126 = vector.broadcast %cst_27 : f32 to vector<8x128xf32>
    %127 = arith.subf %126, %125 : vector<8x128xf32>
    %128 = math.exp %127 : vector<8x128xf32>
    %cst_28 = arith.constant 1.000000e+00 : f32
    %129 = vector.broadcast %cst_28 : f32 to vector<8x128xf32>
    %130 = arith.subf %129, %128 : vector<8x128xf32>
    %131 = arith.mulf %125, %128 : vector<8x128xf32>
    %132 = tpu.reciprocal %123 {approx = true} : vector<8x128xf32> -> vector<8x128xf32>
    %133 = arith.mulf %123, %132 : vector<8x128xf32>
    %cst_29 = arith.constant 2.000000e+00 : f32
    %134 = vector.broadcast %cst_29 : f32 to vector<8x128xf32>
    %135 = arith.subf %134, %133 : vector<8x128xf32>
    %136 = arith.mulf %132, %135 : vector<8x128xf32>
    %137 = arith.mulf %136, %136 : vector<8x128xf32>
    %138 = arith.mulf %137, %136 : vector<8x128xf32>
    %139 = arith.mulf %130, %136 : vector<8x128xf32>
    %140 = arith.mulf %116, %139 : vector<8x128xf32>
    %141 = arith.subf %131, %130 : vector<8x128xf32>
    %142 = arith.mulf %141, %137 : vector<8x128xf32>
    %143 = arith.mulf %116, %142 : vector<8x128xf32>
    %144 = arith.addf %130, %130 : vector<8x128xf32>
    %cst_30 = arith.constant 2.000000e+00 : f32
    %145 = vector.broadcast %cst_30 : f32 to vector<8x128xf32>
    %146 = arith.addf %125, %145 : vector<8x128xf32>
    %147 = arith.mulf %131, %146 : vector<8x128xf32>
    %148 = arith.subf %144, %147 : vector<8x128xf32>
    %149 = arith.mulf %148, %138 : vector<8x128xf32>
    %150 = arith.mulf %116, %149 : vector<8x128xf32>
    %151 = arith.addf %143, %143 : vector<8x128xf32>
    %152 = arith.addf %150, %150 : vector<8x128xf32>
    %153 = arith.mulf %118, %120 : vector<8x128xf32>
    %154 = arith.mulf %121, %152 : vector<8x128xf32>
    %155 = arith.addf %154, %143 : vector<8x128xf32>
    %156 = arith.mulf %122, %152 : vector<8x128xf32>
    %157 = arith.addf %156, %143 : vector<8x128xf32>
    %158 = arith.addf %120, %120 : vector<8x128xf32>
    %159 = arith.addf %118, %118 : vector<8x128xf32>
    %160 = arith.mulf %140, %120 : vector<8x128xf32>
    %161 = arith.addf %80, %160 : vector<8x128xf32>
    %162 = arith.mulf %140, %118 : vector<8x128xf32>
    %163 = arith.addf %82, %162 : vector<8x128xf32>
    %164 = arith.mulf %151, %153 : vector<8x128xf32>
    %165 = arith.addf %84, %164 : vector<8x128xf32>
    %166 = arith.mulf %122, %151 : vector<8x128xf32>
    %167 = arith.addf %166, %140 : vector<8x128xf32>
    %168 = arith.addf %87, %167 : vector<8x128xf32>
    %169 = arith.mulf %121, %151 : vector<8x128xf32>
    %170 = arith.addf %169, %140 : vector<8x128xf32>
    %171 = arith.addf %90, %170 : vector<8x128xf32>
    %172 = arith.mulf %158, %155 : vector<8x128xf32>
    %173 = arith.addf %92, %172 : vector<8x128xf32>
    %174 = arith.addf %157, %151 : vector<8x128xf32>
    %175 = arith.mulf %158, %174 : vector<8x128xf32>
    %176 = arith.addf %95, %175 : vector<8x128xf32>
    %177 = arith.mulf %159, %157 : vector<8x128xf32>
    %178 = arith.addf %97, %177 : vector<8x128xf32>
    %179 = arith.addf %155, %151 : vector<8x128xf32>
    %180 = arith.mulf %159, %179 : vector<8x128xf32>
    %181 = arith.addf %100, %180 : vector<8x128xf32>
    %c2_i32 = arith.constant 2 : i32
    %c0_31 = arith.constant 0 : index
    %c0_32 = arith.constant 0 : index
    %182 = vector.load %arg6[%c0_31, %c0_32] : memref<16x128xf32, #tpu.memory_space<vmem>>, vector<1x128xf32>
    %cst_33 = arith.constant dense<0.000000e+00> : vector<128xf32>
    %183 = vector.multi_reduction <add>, %161, %cst_33 [0] : vector<8x128xf32> to vector<128xf32>
    %184 = vector.shape_cast %183 : vector<128xf32> to vector<1x128xf32>
    %185 = arith.addf %182, %184 : vector<1x128xf32>
    %c0_34 = arith.constant 0 : index
    %c0_35 = arith.constant 0 : index
    %186 = vector.load %arg6[%c0_34, %c0_35] : memref<16x128xf32, #tpu.memory_space<vmem>>, vector<1x128xf32>
    tpu.vector_store %arg6[%c0_34, %c0_35], %185 {strides = array<i32>} : memref<16x128xf32, #tpu.memory_space<vmem>>, vector<1x128xf32>,
    %c1_36 = arith.constant 1 : index
    %c0_37 = arith.constant 0 : index
    %187 = vector.load %arg6[%c1_36, %c0_37] : memref<16x128xf32, #tpu.memory_space<vmem>>, vector<1x128xf32>
    %cst_38 = arith.constant dense<0.000000e+00> : vector<128xf32>
    %188 = vector.multi_reduction <add>, %163, %cst_38 [0] : vector<8x128xf32> to vector<128xf32>
    %189 = vector.shape_cast %188 : vector<128xf32> to vector<1x128xf32>
    %190 = arith.addf %187, %189 : vector<1x128xf32>
    %c1_39 = arith.constant 1 : index
    %c0_40 = arith.constant 0 : index
    %191 = vector.load %arg6[%c1_39, %c0_40] : memref<16x128xf32, #tpu.memory_space<vmem>>, vector<1x128xf32>
    tpu.vector_store %arg6[%c1_39, %c0_40], %190 {strides = array<i32>} : memref<16x128xf32, #tpu.memory_space<vmem>>, vector<1x128xf32>,
    %c2 = arith.constant 2 : index
    %c0_41 = arith.constant 0 : index
    %192 = vector.load %arg6[%c2, %c0_41] : memref<16x128xf32, #tpu.memory_space<vmem>>, vector<1x128xf32>
    %cst_42 = arith.constant dense<0.000000e+00> : vector<128xf32>
    %193 = vector.multi_reduction <add>, %165, %cst_42 [0] : vector<8x128xf32> to vector<128xf32>
    %194 = vector.shape_cast %193 : vector<128xf32> to vector<1x128xf32>
    %195 = arith.addf %192, %194 : vector<1x128xf32>
    %c2_43 = arith.constant 2 : index
    %c0_44 = arith.constant 0 : index
    %196 = vector.load %arg6[%c2_43, %c0_44] : memref<16x128xf32, #tpu.memory_space<vmem>>, vector<1x128xf32>
    tpu.vector_store %arg6[%c2_43, %c0_44], %195 {strides = array<i32>} : memref<16x128xf32, #tpu.memory_space<vmem>>, vector<1x128xf32>,
    %c3 = arith.constant 3 : index
    %c0_45 = arith.constant 0 : index
    %197 = vector.load %arg6[%c3, %c0_45] : memref<16x128xf32, #tpu.memory_space<vmem>>, vector<1x128xf32>
    %cst_46 = arith.constant dense<0.000000e+00> : vector<128xf32>
    %198 = vector.multi_reduction <add>, %168, %cst_46 [0] : vector<8x128xf32> to vector<128xf32>
    %199 = vector.shape_cast %198 : vector<128xf32> to vector<1x128xf32>
    %200 = arith.addf %197, %199 : vector<1x128xf32>
    %c3_47 = arith.constant 3 : index
    %c0_48 = arith.constant 0 : index
    %201 = vector.load %arg6[%c3_47, %c0_48] : memref<16x128xf32, #tpu.memory_space<vmem>>, vector<1x128xf32>
    tpu.vector_store %arg6[%c3_47, %c0_48], %200 {strides = array<i32>} : memref<16x128xf32, #tpu.memory_space<vmem>>, vector<1x128xf32>,
    %c4 = arith.constant 4 : index
    %c0_49 = arith.constant 0 : index
    %202 = vector.load %arg6[%c4, %c0_49] : memref<16x128xf32, #tpu.memory_space<vmem>>, vector<1x128xf32>
    %cst_50 = arith.constant dense<0.000000e+00> : vector<128xf32>
    %203 = vector.multi_reduction <add>, %171, %cst_50 [0] : vector<8x128xf32> to vector<128xf32>
    %204 = vector.shape_cast %203 : vector<128xf32> to vector<1x128xf32>
    %205 = arith.addf %202, %204 : vector<1x128xf32>
    %c4_51 = arith.constant 4 : index
    %c0_52 = arith.constant 0 : index
    %206 = vector.load %arg6[%c4_51, %c0_52] : memref<16x128xf32, #tpu.memory_space<vmem>>, vector<1x128xf32>
    tpu.vector_store %arg6[%c4_51, %c0_52], %205 {strides = array<i32>} : memref<16x128xf32, #tpu.memory_space<vmem>>, vector<1x128xf32>,
    %c5 = arith.constant 5 : index
    %c0_53 = arith.constant 0 : index
    %207 = vector.load %arg6[%c5, %c0_53] : memref<16x128xf32, #tpu.memory_space<vmem>>, vector<1x128xf32>
    %cst_54 = arith.constant dense<0.000000e+00> : vector<128xf32>
    %208 = vector.multi_reduction <add>, %173, %cst_54 [0] : vector<8x128xf32> to vector<128xf32>
    %209 = vector.shape_cast %208 : vector<128xf32> to vector<1x128xf32>
    %210 = arith.addf %207, %209 : vector<1x128xf32>
    %c5_55 = arith.constant 5 : index
    %c0_56 = arith.constant 0 : index
    %211 = vector.load %arg6[%c5_55, %c0_56] : memref<16x128xf32, #tpu.memory_space<vmem>>, vector<1x128xf32>
    tpu.vector_store %arg6[%c5_55, %c0_56], %210 {strides = array<i32>} : memref<16x128xf32, #tpu.memory_space<vmem>>, vector<1x128xf32>,
    %c6 = arith.constant 6 : index
    %c0_57 = arith.constant 0 : index
    %212 = vector.load %arg6[%c6, %c0_57] : memref<16x128xf32, #tpu.memory_space<vmem>>, vector<1x128xf32>
    %cst_58 = arith.constant dense<0.000000e+00> : vector<128xf32>
    %213 = vector.multi_reduction <add>, %176, %cst_58 [0] : vector<8x128xf32> to vector<128xf32>
    %214 = vector.shape_cast %213 : vector<128xf32> to vector<1x128xf32>
    %215 = arith.addf %212, %214 : vector<1x128xf32>
    %c6_59 = arith.constant 6 : index
    %c0_60 = arith.constant 0 : index
    %216 = vector.load %arg6[%c6_59, %c0_60] : memref<16x128xf32, #tpu.memory_space<vmem>>, vector<1x128xf32>
    tpu.vector_store %arg6[%c6_59, %c0_60], %215 {strides = array<i32>} : memref<16x128xf32, #tpu.memory_space<vmem>>, vector<1x128xf32>,
    %c7 = arith.constant 7 : index
    %c0_61 = arith.constant 0 : index
    %217 = vector.load %arg6[%c7, %c0_61] : memref<16x128xf32, #tpu.memory_space<vmem>>, vector<1x128xf32>
    %cst_62 = arith.constant dense<0.000000e+00> : vector<128xf32>
    %218 = vector.multi_reduction <add>, %178, %cst_62 [0] : vector<8x128xf32> to vector<128xf32>
    %219 = vector.shape_cast %218 : vector<128xf32> to vector<1x128xf32>
    %220 = arith.addf %217, %219 : vector<1x128xf32>
    %c7_63 = arith.constant 7 : index
    %c0_64 = arith.constant 0 : index
    %221 = vector.load %arg6[%c7_63, %c0_64] : memref<16x128xf32, #tpu.memory_space<vmem>>, vector<1x128xf32>
    tpu.vector_store %arg6[%c7_63, %c0_64], %220 {strides = array<i32>} : memref<16x128xf32, #tpu.memory_space<vmem>>, vector<1x128xf32>,
    %c8 = arith.constant 8 : index
    %c0_65 = arith.constant 0 : index
    %222 = vector.load %arg6[%c8, %c0_65] : memref<16x128xf32, #tpu.memory_space<vmem>>, vector<1x128xf32>
    %cst_66 = arith.constant dense<0.000000e+00> : vector<128xf32>
    %223 = vector.multi_reduction <add>, %181, %cst_66 [0] : vector<8x128xf32> to vector<128xf32>
    %224 = vector.shape_cast %223 : vector<128xf32> to vector<1x128xf32>
    %225 = arith.addf %222, %224 : vector<1x128xf32>
    %c8_67 = arith.constant 8 : index
    %c0_68 = arith.constant 0 : index
    %226 = vector.load %arg6[%c8_67, %c0_68] : memref<16x128xf32, #tpu.memory_space<vmem>>, vector<1x128xf32>
    tpu.vector_store %arg6[%c8_67, %c0_68], %225 {strides = array<i32>} : memref<16x128xf32, #tpu.memory_space<vmem>>, vector<1x128xf32>,
    %c0_i32_69 = arith.constant 0 : i32
    %227 = arith.cmpi eq, %arg2, %c0_i32_69 : i32
    %228 = arith.extui %227 : i1 to i32
    %c0_i32_70 = arith.constant 0 : i32
    %229 = arith.cmpi ne, %228, %c0_i32_70 : i32
    scf.if %229 {
      %c0_71 = arith.constant 0 : index
      %c0_72 = arith.constant 0 : index
      %230 = vector.load %arg6[%c0_71, %c0_72] : memref<16x128xf32, #tpu.memory_space<vmem>>, vector<16x128xf32>
      %231 = vector.extract_strided_slice %230 {offsets = [0, 0], sizes = [1, 128], strides = [1, 1]} : vector<16x128xf32> to vector<1x128xf32>
      %232 = vector.extract_strided_slice %230 {offsets = [1, 0], sizes = [1, 128], strides = [1, 1]} : vector<16x128xf32> to vector<1x128xf32>
      %cst_73 = arith.constant 0.000000e+00 : f32
      %233 = vector.broadcast %cst_73 : f32 to vector<1x128xf32>
      %234 = arith.subf %233, %232 : vector<1x128xf32>
      %235 = vector.extract_strided_slice %230 {offsets = [2, 0], sizes = [2, 128], strides = [1, 1]} : vector<16x128xf32> to vector<2x128xf32>
      %236 = vector.extract_strided_slice %230 {offsets = [4, 0], sizes = [1, 128], strides = [1, 1]} : vector<16x128xf32> to vector<1x128xf32>
      %cst_74 = arith.constant 0.000000e+00 : f32
      %237 = vector.broadcast %cst_74 : f32 to vector<1x128xf32>
      %238 = arith.subf %237, %236 : vector<1x128xf32>
      %239 = vector.extract_strided_slice %230 {offsets = [2, 0], sizes = [1, 128], strides = [1, 1]} : vector<16x128xf32> to vector<1x128xf32>
      %cst_75 = arith.constant 0.000000e+00 : f32
      %240 = vector.broadcast %cst_75 : f32 to vector<1x128xf32>
      %241 = arith.subf %240, %239 : vector<1x128xf32>
      %242 = vector.extract_strided_slice %230 {offsets = [5, 0], sizes = [3, 128], strides = [1, 1]} : vector<16x128xf32> to vector<3x128xf32>
      %243 = vector.extract_strided_slice %230 {offsets = [8, 0], sizes = [1, 128], strides = [1, 1]} : vector<16x128xf32> to vector<1x128xf32>
      %cst_76 = arith.constant 0.000000e+00 : f32
      %244 = vector.broadcast %cst_76 : f32 to vector<1x128xf32>
      %245 = arith.subf %244, %243 : vector<1x128xf32>
      %246 = vector.extract_strided_slice %230 {offsets = [7, 0], sizes = [1, 128], strides = [1, 1]} : vector<16x128xf32> to vector<1x128xf32>
      %cst_77 = arith.constant 0.000000e+00 : f32
      %247 = vector.broadcast %cst_77 : f32 to vector<1x128xf32>
      %248 = arith.subf %247, %246 : vector<1x128xf32>
      %249 = vector.extract_strided_slice %230 {offsets = [5, 0], sizes = [1, 128], strides = [1, 1]} : vector<16x128xf32> to vector<1x128xf32>
      %cst_78 = arith.constant 0.000000e+00 : f32
      %250 = vector.broadcast %cst_78 : f32 to vector<1x128xf32>
      %251 = arith.subf %250, %249 : vector<1x128xf32>
      %252 = tpu.concatenate %231, %234, %235, %238, %241, %242, %245, %248, %251 in 0 : vector<1x128xf32>, vector<1x128xf32>, vector<2x128xf32>, vector<1x128xf32>, vector<1x128xf32>, vector<3x128xf32>, vector<1x128xf32>, vector<1x128xf32>, vector<1x128xf32> -> vector<12x128xf32>
      %c0_79 = arith.constant 0 : index
      %c0_80 = arith.constant 0 : index
      %c0_81 = arith.constant 0 : index
      %253 = vector.load %arg5[%c0_79, %c0_80, %c0_81] : memref<1x12x128xf32, #tpu.memory_space<vmem>>, vector<1x12x128xf32>
      %254 = vector.shape_cast %253 : vector<1x12x128xf32> to vector<12x128xf32>
      %255 = vector.shape_cast %252 : vector<12x128xf32> to vector<1x12x128xf32>
      tpu.vector_store %arg5[%c0_79, %c0_80, %c0_81], %255 {strides = array<i32>} : memref<1x12x128xf32, #tpu.memory_space<vmem>>, vector<1x12x128xf32>,
    } else {
    }
    return
  }
  func.func @transform_0(%arg0: i32, %arg1: i32, %arg2: i32) -> (i32, i32, i32) {
    %c0_i32 = arith.constant 0 : i32
    %c0_i32_0 = arith.constant 0 : i32
    return %arg0, %arg2, %c0_i32 : i32, i32, i32
  }
  func.func @transform_1(%arg0: i32, %arg1: i32, %arg2: i32) -> (i32, i32, i32) {
    %c0_i32 = arith.constant 0 : i32
    %c0_i32_0 = arith.constant 0 : i32
    return %arg0, %c0_i32, %arg1 : i32, i32, i32
  }
  func.func @transform_2(%arg0: i32, %arg1: i32, %arg2: i32) -> (i32, i32, i32) {
    %c0_i32 = arith.constant 0 : i32
    %c0_i32_0 = arith.constant 0 : i32
    return %arg0, %c0_i32, %arg1 : i32, i32, i32
  }
}

</mosaic_0001>

<bundles_post_ra>
// kernel: tpu_custom_call.1
= control target key start
LH: loop header
LB: loop body
LE: loop exit
PB: predicated region body
PF: predicated region fallthrough
CT: control target
= control target key end

     0   :  { %s723_s9 = smov 0   ;;  %s725_s10 = smov 0   ;;  %s827_s0 = inlined_call_operand.vmem [shape: f32[2,16,4], index: 0, kind: input, shape index: {}]   ;;  %s828_s1 = inlined_call_operand.vmem [shape: f32[2,2,128], index: 1, kind: input, shape index: {}]   ;;  %s829_s2 = inlined_call_operand.vmem [shape: f32[2,12,128], index: 2, kind: output, shape index: {}]  }
   0x1   :  { %s727_s11 = smov 0  }
   0x2 LB: > { %s31_s12 = sadd.s32 1, %s697_s10  ;;  %p618_p0 = scmp.ge.s32.totalorder %s701_s11, 1  ;;  %s701_s11 = sphi %s727_s11, %s12_s11   ;;  %s697_s10 = sphi %s725_s10, %s831_s10   ;;  %s693_s9 = sphi %s723_s9, %s830_s9  }
   0x3   : > { %p33_p1 = scmp.ge.s32.totalorder %s31_s12, 2  ;;  %p154_p2 = scmp.lt.s32.totalorder %s701_s11, 3 }
   0x5   : > { %s833_s12 = smov (%p33_p1, %s31_s12), 0  ;;  %p155_p3 = pnand %p618_p0, %p154_p2 }
   0x6   : > { %p191_p4 = scmp.lt.s32.totalorder (!%p155_p3), %s693_s9, 1  ;;  %v703_v0 = vmov (!%p155_p3), 0   ;;  %v704_v5 = vmov (!%p155_p3), 1   ;;  %v705_v6 = vmov (!%p155_p3), 3   ;;  %v706_v10 = vmov (!%p155_p3), 2  }
   0x7   : > { %158 = sbr.rel (%p155_p3) target bundleno = 236 (0xec), region = 28  ;;  %662 = vset.pattern.permute.xlu1 (!%p155_p3), %v703_v0  ;;  %660 = vset.pattern.permute.xlu0 (!%p155_p3), %v703_v0  ;;  %v707_v12 = vmov (!%p155_p3), 0.0   ;;  %vm497_vm0 = vcmask (!%p155_p3), 1040384   ;;  %vm499_vm1 = vcmask (!%p155_p3), 1041408   ;;  %vm501_vm2 = vcmask (!%p155_p3), 1043456  }
   0x8   : > { %219 = vst [vmem:[#allocation2] sm:$0xff] (!%p155_p3), %v707_v12  ;;  %220 = vst [vmem:[#allocation2 + $0x8] sm:$0xff] (!%p155_p3), %v707_v12  ;;  %vm503_vm3 = vcmask (!%p155_p3), 1044480   ;;  %vm505_vm4 = vcmask (!%p155_p3), 1045504   ;;  %vm509_vm5 = vcmask (!%p155_p3), 1042432  }
   0xe   : > { %s835_s9 = smov (!%p191_p4, %s693_s9), 1 }
   0xf   : > { %s629_s13 = sshll.u32 %s835_s9, 4  ;;  %s621_s17 = sshll.u32 %s835_s9, 1 }
  0x10   : > { %s198_s16 = scalar_lea.vmem %s827_s0, %s629_s13  ;;  %s206_s20 = scalar_lea.vmem %s828_s1, %s621_s17 }
  0x11   : > { %v626_v1 = vld [vmem:[%s198_s16 + $0x8] sm:$0xff]  ;;  %v231_v2 = vld [vmem:[%s198_s16] sm:$0xff]  ;;  %s214_s23 = scalar_lea.vmem %s829_s2, %s629_s13 }
  0x12   : > { %327 = vperm.xlu1 %662, %v626_v1   ;;  %v316_v3 = vmul.f32 %v626_v1, %v626_v1  ;;  %243 = vperm.xlu0 %660, %v231_v2   ;;  %v232_v4 = vmul.f32 %v231_v2, %v231_v2  ;;  %v235_v9 = vmul.f32 0.15915494, %v231_v2  ;;  %v319_v11 = vmul.f32 0.15915494, %v626_v1  ;;  %v624_v15 = vld [vmem:[%s206_s20] ss:$0 sm:$0xff] }
  0x13   : > { %v625_v16 = vld [vmem:[%s206_s20 + $0x1] ss:$0 sm:$0xff] }
  0x14   : > { %667 = vrcp.f32 %v316_v3 }
  0x15   : > { %669 = vrcp.f32 %v232_v4 }
  0x16   : > { %663 = vset.pattern.permute.xlu1 %v704_v5  ;;  %661 = vset.pattern.permute.xlu0 %v704_v5 }
  0x17   : > { %332 = vperm.xlu1 %663, %v626_v1   ;;  %248 = vperm.xlu0 %661, %v231_v2  }
  0x1b   : > { %664 = vset.pattern.permute.xlu1 %v705_v6  ;;  %665 = vset.pattern.permute.xlu0 %v705_v6 }
  0x1e   : > { %v668_v7 = vpop.eup %667 }
  0x1f   : > { %v670_v8 = vpop.eup %669  ;;  %341 = vperm.xlu0 %665, %v668_v7  }
  0x20   : > { %257 = vperm.xlu1 %664, %v670_v8  }
  0x24   : > { %666 = vset.pattern.permute.xlu1 %v706_v10 }
  0x25   : > { %238 = vperm.xlu1 %666, %v235_v9  }
  0x29   : > { %322 = vperm.xlu1 %666, %v319_v11  }
  0x91   : > { %v328_v13 = vpop.permute.xlu1 %327  ;;  %v244_v14 = vpop.permute.xlu0 %243 }
  0x92   : > { %v753_v17 = vsub.f32 %v624_v15, %v328_v13  ;;  %v755_v18 = vsub.f32 %v624_v15, %v244_v14 }
  0x94   : > { %v761_v23 = vmul.f32 %v753_v17, %v753_v17  ;;  %v765_v24 = vmul.f32 %v755_v18, %v755_v18  ;;  %v779_v47 = vadd.f32 %v753_v17, %v753_v17  ;;  %v783_v48 = vadd.f32 %v755_v18, %v755_v18 }
  0x96   : > { %v333_v19 = vpop.permute.xlu1 %332  ;;  %v249_v20 = vpop.permute.xlu0 %248 }
  0x97   : > { %v335_v21 = vsub.f32 %v625_v16, %v333_v19  ;;  %v757_v22 = vsub.f32 %v625_v16, %v249_v20 }
  0x99   : > { %v767_v25 = vmul.f32 %v335_v21, %v335_v21  ;;  %v771_v26 = vmul.f32 %v757_v22, %v757_v22  ;;  %v369_v49 = vmul.f32 %v335_v21, %v753_v17  ;;  %v786_v50 = vadd.f32 %v335_v21, %v335_v21 }
  0x9b   : > { %v338_v27 = vadd.f32 %v767_v25, %v761_v23  ;;  %v254_v28 = vadd.f32 %v771_v26, %v765_v24 }
  0x9d   : > { %671 = vrcp.f32 %v338_v27 }
  0x9e   : > { %v342_v29 = vpop.permute.xlu0 %341  ;;  %673 = vrcp.f32 %v254_v28 }
  0x9f   : > { %v344_v30 = vmul.f32 %v342_v29, %v338_v27  ;;  %v258_v31 = vpop.permute.xlu1 %257  ;;  %v285_v29 = vmul.f32 %v757_v22, %v755_v18 }
  0xa0   : > { %v260_v32 = vmul.f32 %v258_v31, %v254_v28 }
  0xa1   : > { %v345_v33 = vsub.f32 0.0, %v344_v30  ;;  %v362_v53 = vadd.f32 2.0, %v344_v30 }
  0xa2   : > { %v261_v34 = vsub.f32 0.0, %v260_v32  ;;  %v278_v58 = vadd.f32 2.0, %v260_v32 }
  0xa3   : > { %v346_v35 = vmul.f32 1.442695, %v345_v33 }
  0xa4   : > { %v262_v36 = vmul.f32 1.442695, %v261_v34  ;;  %v239_v43 = vpop.permute.xlu1 %238 }
  0xa5   : > { %675 = vpow2.f32 %v346_v35 }
  0xa6   : > { %677 = vpow2.f32 %v262_v36 }
  0xa7   : > { %v672_v37 = vpop.eup %671 }
  0xa8   : > { %v674_v38 = vpop.eup %673  ;;  %v351_v39 = vmul.f32 %v672_v37, %v338_v27  ;;  %v323_v60 = vpop.permute.xlu1 %322 }
  0xa9   : > { %v267_v40 = vmul.f32 %v674_v38, %v254_v28 }
  0xaa   : > { %v352_v41 = vsub.f32 2.0, %v351_v39 }
  0xab   : > { %v268_v42 = vsub.f32 2.0, %v267_v40 }
  0xac   : > { %v353_v44 = vmul.f32 %v672_v37, %v352_v41 }
  0xad   : > { %v269_v45 = vmul.f32 %v674_v38, %v268_v42 }
  0xae   : > { %v354_v55 = vmul.f32 %v353_v44, %v353_v44 }
  0xaf   : > { %v676_v46 = vpop.eup %675  ;;  %v270_v59 = vmul.f32 %v269_v45, %v269_v45 }
  0xb0   : > { %v678_v51 = vpop.eup %677  ;;  %v349_v52 = vmul.f32 %v676_v46, %v344_v30  ;;  %v348_v54 = vsub.f32 1.0, %v676_v46  ;;  %v355_v5 = vmul.f32 %v354_v55, %v353_v44  ;;  %v290_v30 = vadd.f32 %v757_v22, %v757_v22 }
  0xb1   : > { %v264_v56 = vsub.f32 1.0, %v678_v51  ;;  %v265_v57 = vmul.f32 %v678_v51, %v260_v32  ;;  %v271_v9 = vmul.f32 %v270_v59, %v269_v45 }
  0xb2   : > { %v363_v61 = vmul.f32 %v362_v53, %v349_v52  ;;  %v356_v62 = vmul.f32 %v353_v44, %v348_v54  ;;  %v358_v63 = vsub.f32 %v349_v52, %v348_v54  ;;  %v361_v0 = vadd.f32 %v348_v54, %v348_v54 }
  0xb3   : > { %v274_v1 = vsub.f32 %v265_v57, %v264_v56  ;;  %v279_v2 = vmul.f32 %v278_v58, %v265_v57  ;;  %v272_v3 = vmul.f32 %v269_v45, %v264_v56  ;;  %v277_v4 = vadd.f32 %v264_v56, %v264_v56 }
  0xb4   : > { %v359_v6 = vmul.f32 %v358_v63, %v354_v55  ;;  %v364_v7 = vsub.f32 %v361_v0, %v363_v61  ;;  %v357_v8 = vmul.f32 %v356_v62, %v323_v60 }
  0xb5   : > { %v275_v10 = vmul.f32 %v274_v1, %v270_v59  ;;  %v280_v11 = vsub.f32 %v277_v4, %v279_v2  ;;  %v273_v12 = vmul.f32 %v272_v3, %v239_v43 }
  0xb6   : > { %v365_v13 = vmul.f32 %v364_v7, %v355_v5  ;;  %v360_v14 = vmul.f32 %v359_v6, %v323_v60  ;;  %v376_v15 = vmul.f32 %v357_v8, %v335_v21  ;;  %v378_v16 = vmul.f32 %v357_v8, %v753_v17 }
  0xb7   : > { %v281_v19 = vmul.f32 %v280_v11, %v271_v9  ;;  %v276_v20 = vmul.f32 %v275_v10, %v239_v43  ;;  %v292_v27 = vmul.f32 %v273_v12, %v757_v22  ;;  %v294_v28 = vmul.f32 %v273_v12, %v755_v18 }
  0xb8   : > { %v366_v31 = vmul.f32 %v365_v13, %v323_v60  ;;  %v367_v32 = vadd.f32 %v360_v14, %v360_v14 }
  0xb9   : > { %v282_v33 = vmul.f32 %v281_v19, %v239_v43  ;;  %v283_v34 = vadd.f32 %v276_v20, %v276_v20  ;;  %v377_v35 = vadd.f32 %v376_v15, %v292_v27  ;;  %v379_v21 = vadd.f32 %v378_v16, %v294_v28 }
  0xba   : > { %v368_v36 = vadd.f32 %v366_v31, %v366_v31  ;;  %v380_v17 = vmul.f32 %v369_v49, %v367_v32  ;;  %v382_v37 = vmul.f32 %v367_v32, %v767_v25  ;;  %v385_v38 = vmul.f32 %v367_v32, %v761_v23 }
  0xbb   : > { %v284_v39 = vadd.f32 %v282_v33, %v282_v33  ;;  %v296_v40 = vmul.f32 %v285_v29, %v283_v34  ;;  %v298_v41 = vmul.f32 %v283_v34, %v771_v26  ;;  %v301_v18 = vmul.f32 %v283_v34, %v765_v24  ;;  %v398_v33 = vld [vmem:[#allocation2] sm:$0x1] }
  0xbc   : > { %v370_v22 = vmul.f32 %v368_v36, %v761_v23  ;;  %v372_v42 = vmul.f32 %v368_v36, %v767_v25  ;;  %v383_v43 = vadd.f32 %v382_v37, %v357_v8  ;;  %v386_v44 = vadd.f32 %v385_v38, %v357_v8 }
  0xbd   : > { %v286_v45 = vmul.f32 %v284_v39, %v765_v24  ;;  %v288_v46 = vmul.f32 %v284_v39, %v771_v26  ;;  %v299_v49 = vadd.f32 %v298_v41, %v273_v12  ;;  %v302_v51 = vadd.f32 %v301_v18, %v273_v12 }
  0xbe   : > { %v371_v52 = vadd.f32 %v370_v22, %v360_v14  ;;  %v373_v53 = vadd.f32 %v372_v42, %v360_v14  ;;  %v381_v54 = vadd.f32 %v380_v17, %v296_v40  ;;  %v399_v55 = vrot.slane %v377_v35, 4  ;;  %v407_v40 = vld [vmem:[#allocation2 + $0x1] sm:$0x1] }
  0xbf   : > { %v287_v56 = vadd.f32 %v286_v45, %v276_v20  ;;  %v289_v57 = vadd.f32 %v288_v46, %v276_v20  ;;  %v384_v58 = vadd.f32 %v383_v43, %v299_v49  ;;  %v387_v59 = vadd.f32 %v386_v44, %v302_v51  ;;  %v416_v49 = vld [vmem:[#allocation2 + $0x2] sm:$0x1]  ;;  %v425_v51 = vld [vmem:[#allocation2 + $0x3] sm:$0x1] }
  0xc0   : > { %v388_v23 = vmul.f32 %v786_v50, %v371_v52  ;;  %v390_v60 = vadd.f32 %v373_v53, %v367_v32  ;;  %v393_v25 = vmul.f32 %v779_v47, %v373_v53  ;;  %v395_v61 = vadd.f32 %v371_v52, %v367_v32 }
  0xc1   : > { %v304_v62 = vmul.f32 %v290_v30, %v287_v56  ;;  %v306_v24 = vadd.f32 %v289_v57, %v283_v34  ;;  %v309_v26 = vmul.f32 %v783_v48, %v289_v57  ;;  %v311_v63 = vadd.f32 %v287_v56, %v283_v34  ;;  %v434_v56 = vld [vmem:[#allocation2 + $0x4] sm:$0x1]  ;;  %v443_v57 = vld [vmem:[#allocation2 + $0x5] sm:$0x1] }
  0xc2   : > { %v391_v0 = vmul.f32 %v390_v60, %v786_v50  ;;  %v396_v1 = vmul.f32 %v395_v61, %v779_v47  ;;  %v400_v2 = vadd.f32 %v399_v55, %v377_v35  ;;  %v408_v3 = vrot.slane %v379_v21, 4 }
  0xc3   : > { %v307_v4 = vmul.f32 %v306_v24, %v290_v30  ;;  %v312_v5 = vmul.f32 %v311_v63, %v783_v48  ;;  %v389_v6 = vadd.f32 %v388_v23, %v304_v62  ;;  %v394_v7 = vadd.f32 %v393_v25, %v309_v26  ;;  %v452_v26 = vld [vmem:[#allocation2 + $0x6] sm:$0x1]  ;;  %v461_v63 = vld [vmem:[#allocation2 + $0x7] sm:$0x1] }
  0xc4   : > { %v401_v8 = vrot.slane %v400_v2, 2  ;;  %v409_v9 = vadd.f32 %v408_v3, %v379_v21  ;;  %v417_v10 = vrot.slane %v381_v54, 4  ;;  %v426_v11 = vrot.slane %v384_v58, 4 }
  0xc5   : > { %v392_v12 = vadd.f32 %v391_v0, %v307_v4  ;;  %v397_v13 = vadd.f32 %v396_v1, %v312_v5  ;;  %v435_v14 = vrot.slane %v387_v59, 4  ;;  %v444_v15 = vrot.slane %v389_v6, 4 }
  0xc6   : > { %v402_v16 = vadd.f32 %v401_v8, %v400_v2  ;;  %v410_v19 = vrot.slane %v409_v9, 2  ;;  %v418_v50 = vadd.f32 %v417_v10, %v381_v54  ;;  %v427_v20 = vadd.f32 %v426_v11, %v384_v58 }
  0xc7   : > { %v436_v47 = vadd.f32 %v435_v14, %v387_v59  ;;  %v445_v27 = vadd.f32 %v444_v15, %v389_v6  ;;  %v453_v28 = vrot.slane %v392_v12, 4  ;;  %v462_v29 = vrot.slane %v394_v7, 4 }
  0xc8   : > { %v403_v30 = vrot.slane %v402_v16, 1  ;;  %v411_v48 = vadd.f32 %v410_v19, %v409_v9  ;;  %v419_v31 = vrot.slane %v418_v50, 2  ;;  %v428_v32 = vrot.slane %v427_v20, 2 }
  0xc9   : > { %v437_v34 = vrot.slane %v436_v47, 2  ;;  %v446_v35 = vrot.slane %v445_v27, 2  ;;  %v454_v21 = vadd.f32 %v453_v28, %v392_v12  ;;  %v463_v36 = vadd.f32 %v462_v29, %v394_v7  ;;  %v470_v12 = vld [vmem:[#allocation2 + $0x8] sm:$0x1] }
  0xca   : > { %v404_v17 = vadd.f32 %v403_v30, %v402_v16  ;;  %v412_v37 = vrot.slane %v411_v48, 1  ;;  %v420_v38 = vadd.f32 %v419_v31, %v418_v50  ;;  %v429_v39 = vadd.f32 %v428_v32, %v427_v20 }
  0xcb   : > { %v438_v41 = vadd.f32 %v437_v34, %v436_v47  ;;  %v447_v18 = vadd.f32 %v446_v35, %v445_v27  ;;  %v455_v22 = vrot.slane %v454_v21, 2  ;;  %v464_v42 = vrot.slane %v463_v36, 2 }
  0xcc   : > { %v405_v43 = vadd.f32 %v404_v17, %v398_v33  ;;  %v413_v44 = vadd.f32 %v412_v37, %v411_v48  ;;  %v421_v45 = vrot.slane %v420_v38, 1  ;;  %v430_v46 = vrot.slane %v429_v39, 1 }
  0xcd   : > { %v439_v52 = vrot.slane %v438_v41, 1  ;;  %v448_v53 = vrot.slane %v447_v18, 1  ;;  %v456_v54 = vadd.f32 %v455_v22, %v454_v21  ;;  %v465_v55 = vadd.f32 %v464_v42, %v463_v36 }
  0xce   : > { %406 = vst [vmem:[#allocation2] sm:$0x1] %v405_v43  ;;  %v414_v58 = vadd.f32 %v413_v44, %v407_v40  ;;  %v422_v59 = vadd.f32 %v421_v45, %v420_v38  ;;  %v431_v23 = vadd.f32 %v430_v46, %v429_v39  ;;  %v471_v60 = vrot.slane %v397_v13, 4 }
  0xcf   : > { %v440_v25 = vadd.f32 %v439_v52, %v438_v41  ;;  %v449_v61 = vadd.f32 %v448_v53, %v447_v18  ;;  %v457_v62 = vrot.slane %v456_v54, 1  ;;  %v466_v24 = vrot.slane %v465_v55, 1 }
  0xd0   : > { %415 = vst [vmem:[#allocation2 + $0x1] sm:$0x1] %v414_v58  ;;  %v423_v0 = vadd.f32 %v422_v59, %v416_v49  ;;  %v432_v1 = vadd.f32 %v431_v23, %v425_v51  ;;  %v472_v2 = vadd.f32 %v471_v60, %v397_v13 }
  0xd1   : > { %v441_v3 = vadd.f32 %v440_v25, %v434_v56  ;;  %v450_v4 = vadd.f32 %v449_v61, %v443_v57  ;;  %v458_v5 = vadd.f32 %v457_v62, %v456_v54  ;;  %v467_v6 = vadd.f32 %v466_v24, %v465_v55 }
  0xd2   : > { %424 = vst [vmem:[#allocation2 + $0x2] sm:$0x1] %v423_v0  ;;  %433 = vst [vmem:[#allocation2 + $0x3] sm:$0x1] %v432_v1  ;;  %v473_v7 = vrot.slane %v472_v2, 2 }
  0xd3   : > { %442 = vst [vmem:[#allocation2 + $0x4] sm:$0x1] %v441_v3  ;;  %451 = vst [vmem:[#allocation2 + $0x5] sm:$0x1] %v450_v4  ;;  %v459_v8 = vadd.f32 %v458_v5, %v452_v26  ;;  %v468_v9 = vadd.f32 %v467_v6, %v461_v63 }
  0xd4   : > { %v474_v10 = vadd.f32 %v473_v7, %v472_v2 }
  0xd5   : > { %460 = vst [vmem:[#allocation2 + $0x6] sm:$0x1] %v459_v8  ;;  %469 = vst [vmem:[#allocation2 + $0x7] sm:$0x1] %v468_v9 }
  0xd6   : > { %v475_v11 = vrot.slane %v474_v10, 1 }
  0xd8   : > { %v476_v14 = vadd.f32 %v475_v11, %v474_v10 }
  0xda   : > { %v477_v15 = vadd.f32 %v476_v14, %v470_v12 }
  0xdc   : > { %478 = vst [vmem:[#allocation2 + $0x8] sm:$0x1] %v477_v15  ;;  %v482_v13 = vld [vmem:[#allocation2] sm:$0xff] }
  0xdd   : > { %v484_v16 = vsub.f32 0.0, %v482_v13  ;;  %v490_v47 = vrot.slane %v482_v13, 7 }
  0xdf   : > { %v487_v19 = vrot.slane %v484_v16, 5  ;;  %v498_v50 = vsel %vm497_vm0, %v482_v13, %v484_v16  ;;  %v495_v32 = vrot.slane %v484_v16, 2 }
  0xe0   : > { %v500_v20 = vsel %vm499_vm1, %v498_v50, %v482_v13 }
  0xe1   : > { %v502_v27 = vsel %vm501_vm2, %v500_v20, %v484_v16 }
  0xe2   : > { %v504_v28 = vsel %vm503_vm3, %v502_v27, %v487_v19 }
  0xe3   : > { %v483_v29 = vld [vmem:[#allocation2 + $0x8] sm:$0xff]  ;;  %v506_v30 = vsel %vm505_vm4, %v504_v28, %v490_v47 }
  0xe4   : > { %v485_v48 = vsub.f32 0.0, %v483_v29  ;;  %511 = vst [vmem:[%s214_s23] sm:$0xff] %v506_v30 }
  0xe6   : > { %v493_v31 = vrot.slane %v485_v48, 7 }
  0xe8   : > { %v507_v33 = vsel %vm497_vm0, %v490_v47, %v493_v31 }
  0xe9   : > { %v508_v34 = vsel %vm499_vm1, %v507_v33, %v487_v19 }
  0xea   : > { %v510_v35 = vsel %vm509_vm5, %v508_v34, %v495_v32 }
  0xeb   : > { %512 = vst [vmem:[%s214_s23 + $0x8] sm:$0xf] %v510_v35 }
  0xec PF: > { %s12_s11 = sadd.s32 1, %s701_s11   ;;  %s830_s9 = smov %s697_s10 }
  0xed   : > { %p9_p5 = scmp.ge.s32.totalorder %s12_s11, 4   ;;  %s831_s10 = smov %s833_s12 }
  0xef   :  { %11 = sbr.rel (!%p9_p5) target bundleno = 2 (0x2), region = 70 }

</bundles_post_ra>
